<compile_context>
chip_gen: v7x
topology: tpu7x:2x2x1
jax: 0.10.0
libtpu: 0.0.40
codegen_flags: <defaults>
</compile_context>

<pallas_src>
import jax
import jax.numpy as jnp
from jax.experimental import pallas as pl
from jax.experimental.pallas import tpu as pltpu


def _implicit_a_kernel(imp_ref, x_ref, o_ref):
    # imp_ref: (TM, 1)   x_ref / o_ref: (TM, TN)  -- same dtype, VPU add.
    o_ref[...] = x_ref[...] + imp_ref[...]


def _round_up(v: int, m: int) -> int:
    return ((v + m - 1) // m) * m


def _sublane_multiple(dtype) -> int:
    # f32 -> 8, bf16 -> 16, int8/fp8 -> 32 (sub-32-bit dtypes pack along sublanes).
    return max(1, 32 // jnp.dtype(dtype).itemsize)


def _chip_config():
    """Per-generation (tm_cap, tn_cap, vmem_limit_bytes)."""
    vmem_bytes = None
    try:
        info = pltpu.get_tpu_info()
        vmem_bytes = getattr(info, "vmem_capacity_bytes", None)
    except Exception:
        vmem_bytes = None
    if vmem_bytes is not None and vmem_bytes >= 100 * 1024 * 1024:
        # v5e / v6e: 128 MiB VMEM -> biggest tiles, raised scoped limit.
        return 1024, 2048, 64 * 1024 * 1024
    # v7x (64 MiB VMEM per TC) or unknown: conservative, still large, tiles.
    return 512, 2048, 48 * 1024 * 1024


def implicit_a(x_nchw: jax.Array, implicit: jax.Array) -> jax.Array:
    """out = implicit + x, implicit of shape (1, C, 1, 1), x of shape (N, C, H, W)."""
    N, C, H, W = x_nchw.shape
    rows = N * C
    HW = H * W
    dtype = x_nchw.dtype
    itemsize = jnp.dtype(dtype).itemsize

    # 2D lane-dense view of the activations.
    x2d = x_nchw.reshape(rows, HW)

    # Per-row implicit column (row index n*C + c -> implicit[c]), cast once to
    # the activation dtype so the kernel is a same-dtype add.
    imp_col = (
        jnp.broadcast_to(implicit.reshape(1, C), (N, C))
        .reshape(rows, 1)
        .astype(dtype)
    )

    # Tile sizes: sublane-packed rows, lane-dense (multiple-of-128) columns,
    # capped per chip generation so double-buffered tiles fit the VMEM budget.
    tm_cap, tn_cap, vmem_limit = _chip_config()
    sub = _sublane_multiple(dtype)
    TM = min(tm_cap, _round_up(rows, sub))
    TN = min(tn_cap, _round_up(HW, 128))

    gm = pl.cdiv(rows, TM)
    gn = pl.cdiv(HW, TN)

    # Put the axis with the most blocks first so it shards across v7x's two
    # TensorCores (harmless on single-TC v5e/v6e).
    if gm >= gn:
        grid = (gm, gn)
        x_map = lambda i, j: (i, j)
        imp_map = lambda i, j: (i, 0)   # j-invariant: imp DMA once per row-block
    else:
        grid = (gn, gm)
        x_map = lambda j, i: (i, j)
        imp_map = lambda j, i: (i, 0)

    cost = pl.CostEstimate(
        flops=rows * HW,
        transcendentals=0,
        bytes_accessed=(2 * rows * HW + rows) * itemsize,
    )

    out2d = pl.pallas_call(
        _implicit_a_kernel,
        out_shape=jax.ShapeDtypeStruct((rows, HW), dtype),
        grid=grid,
        in_specs=[
            # implicit column: depends only on the row-block index.
            pl.BlockSpec((TM, 1), imp_map),
            # activations: one (TM, TN) tile per grid point.
            pl.BlockSpec((TM, TN), x_map),
        ],
        out_specs=pl.BlockSpec((TM, TN), x_map),
        compiler_params=pltpu.CompilerParams(
            dimension_semantics=("parallel", "parallel"),
            vmem_limit_bytes=vmem_limit,
        ),
        cost_estimate=cost,
    )(imp_col, x2d)

    return out2d.reshape(N, C, H, W)


if __name__ == "__main__":
    key = jax.random.PRNGKey(0)
    k_imp, k_x = jax.random.split(key)

    N, C, H, W = 2, 4, 16, 16
    mean, std = 0.0, 0.02

    # Deterministic parameter init, mirroring nn.init.normal_(mean=0, std=0.02)
    implicit = mean + std * jax.random.normal(k_imp, (1, C, 1, 1), dtype=jnp.float32)
    x = jax.random.normal(k_x, (N, C, H, W), dtype=jnp.float32)

    out = implicit_a(x, implicit)
    out = jax.block_until_ready(out)

    # Reference check (pure JAX broadcast add == PyTorch semantics)
    ref = implicit + x
    assert out.shape == x.shape and out.dtype == x.dtype
    assert jnp.allclose(out, ref, atol=1e-6, rtol=1e-6)

    print("KERNEL_OK")
</pallas_src>

<mosaic_0001>
module attributes {stable_mosaic.version = 11 : i64} {
  func.func @_implicit_a_kernel(%arg0: i32, %arg1: i32, %arg2: memref<8x1xf32, #tpu.memory_space<vmem>>, %arg3: memref<8x256xf32, #tpu.memory_space<vmem>>, %arg4: memref<8x256xf32, #tpu.memory_space<vmem>>) attributes {dimension_semantics = [#tpu.dimension_semantics<parallel>, #tpu.dimension_semantics<parallel>], iteration_bounds = array<i64: 1, 1>, scalar_prefetch = 0 : i64, scratch_operands = 0 : i64, tpu.core_type = #tpu.core_type<tc>, window_params = [{transform_indices = @transform_0, window_bounds = array<i64: 8, 1>}, {transform_indices = @transform_1, window_bounds = array<i64: 8, 256>}, {transform_indices = @transform_2, window_bounds = array<i64: 8, 256>}]} {
    %c0 = arith.constant 0 : index
    %c0_0 = arith.constant 0 : index
    %0 = vector.load %arg3[%c0, %c0_0] : memref<8x256xf32, #tpu.memory_space<vmem>>, vector<8x256xf32>
    %c0_1 = arith.constant 0 : index
    %c0_2 = arith.constant 0 : index
    %1 = vector.load %arg2[%c0_1, %c0_2] : memref<8x1xf32, #tpu.memory_space<vmem>>, vector<8x1xf32>
    %2 = vector.broadcast %1 : vector<8x1xf32> to vector<8x256xf32>
    %3 = arith.addf %0, %2 : vector<8x256xf32>
    %c0_3 = arith.constant 0 : index
    %c0_4 = arith.constant 0 : index
    %4 = vector.load %arg4[%c0_3, %c0_4] : memref<8x256xf32, #tpu.memory_space<vmem>>, vector<8x256xf32>
    tpu.vector_store %arg4[%c0_3, %c0_4], %3 {strides = array<i32>} : memref<8x256xf32, #tpu.memory_space<vmem>>, vector<8x256xf32>,
    return
  }
  func.func @transform_0(%arg0: i32, %arg1: i32) -> (i32, i32) {
    %c0_i32 = arith.constant 0 : i32
    %c0_i32_0 = arith.constant 0 : i32
    return %arg0, %c0_i32 : i32, i32
  }
  func.func @transform_1(%arg0: i32, %arg1: i32) -> (i32, i32) {
    %c0_i32 = arith.constant 0 : i32
    return %arg0, %arg1 : i32, i32
  }
  func.func @transform_2(%arg0: i32, %arg1: i32) -> (i32, i32) {
    %c0_i32 = arith.constant 0 : i32
    return %arg0, %arg1 : i32, i32
  }
}

</mosaic_0001>

<bundles_post_ra>
// kernel: tpu_custom_call.1
= control target key start
LH: loop header
LB: loop body
LE: loop exit
PB: predicated region body
PF: predicated region fallthrough
CT: control target
= control target key end

     0   :  { %7 = vsyncpa [#allocation3], 0  ;;  %s148_s0 = inlined_call_operand.vmem [shape: f32[8,1], index: 0, kind: input, shape index: {}]   ;;  %s149_s1 = inlined_call_operand.hbm [shape: f32[8,256], index: 1, kind: input, shape index: {}]   ;;  %s150_s2 = inlined_call_operand.hbm [shape: f32[8,256], index: 2, kind: output, shape index: {}]  }
   0x1   :  { %8 = vsyncpa [#allocation4], 0  ;;  %s103_s9 = smov [#allocation2]   ;;  %s55_s13 = scalar_lea.hbm %s149_s1, 256 }
   0x2   :  { %s17_s10 = sshll.u32 %s103_s9, 4  ;;  %p56_p0 = scmp.ne.s32.totalorder %s149_s1, %s55_s13  ;;  %s18_s10 = int_to_ptr.vmem [resolvable:$true] %s17_s10 }
   0x3   :  { %p59_p1 = scmp.lt.u32.totalorder %s55_s13, %s149_s1 }
   0x5   :  { %p61_p2 = pnand %p59_p1, %p56_p0 }
   0x7   :  { %64 = shalt.err (!%p61_p2)
}
   0x8   :  { %s65_s18 = scalar_lea.vmem %s18_s10, 256  ;;  %p70_p4 = scmp.lt.s32.totalorder %s18_s10, %s18_s10 }
   0x9   :  { %p66_p3 = scmp.ne.s32.totalorder %s18_s10, %s65_s18  ;;  %p71_p5 = scmp.lt.s32.totalorder %s65_s18, %s65_s18 }
   0xb   :  { %p72_p6 = por %p71_p5, %p70_p4 }
   0xd   :  { %p73_p7 = pnand %p72_p6, %p66_p3 }
   0xf   :  { %76 = shalt.err (!%p73_p7)
}
  0x10   :  { %20 = dma.hbm_to_vmem [thread:$0]  %s149_s1, 256, %s18_s10, [#allocation3]  }
  0x11   :  { %99 = dma.done.wait [#allocation3], 256  }
  0x12   :  { %100 = vsyncadd [#allocation3], 4294967040  ;;  %v104_v0 = vmov 0   ;;  %v26_v1 = vld [vmem:[%s148_s0] sm:$0xff]  ;;  %v25_v3 = vld [vmem:[#allocation2 + $0x8] sm:$0xff]  ;;  %s105_s23 = smov [#allocation5]  }
  0x13   :  { %54 = vset.pattern.permute.xlu0 %v104_v0  ;;  %v24_v2 = vld [vmem:[#allocation2] sm:$0xff]  ;;  %s42_s24 = sshll.u32 %s105_s23, 4  ;;  %s43_s24 = int_to_ptr.vmem [resolvable:$true] %s42_s24 }
  0x14   :  { %29 = vperm.xlu0 %54, %v26_v1   ;;  %s77_s1 = scalar_lea.vmem %s43_s24, 256  ;;  %p82_p9 = scmp.lt.s32.totalorder %s43_s24, %s43_s24 }
  0x15   :  { %p78_p8 = scmp.ne.s32.totalorder %s43_s24, %s77_s1  ;;  %p83_p10 = scmp.lt.s32.totalorder %s77_s1, %s77_s1 }
  0x17   :  { %p84_p11 = por %p83_p10, %p82_p9 }
  0x19   :  { %p85_p12 = pnand %p84_p11, %p78_p8 }
  0x93   :  { %v30_v4 = vpop.permute.xlu0 %29 }
  0x94   :  { %v32_v5 = vadd.f32 %v30_v4, %v24_v2  ;;  %v33_v6 = vadd.f32 %v30_v4, %v25_v3 }
  0x96   :  { %34 = vst [vmem:[#allocation5] sm:$0xff] %v32_v5  ;;  %35 = vst [vmem:[#allocation5 + $0x8] sm:$0xff] %v33_v6 }
  0x97   :  { %88 = shalt.err (!%p85_p12)
}
  0x98   :  { %s89_s26 = scalar_lea.hbm %s150_s2, 256 }
  0x99   :  { %p90_p13 = scmp.ne.s32.totalorder %s150_s2, %s89_s26  ;;  %p93_p0 = scmp.lt.u32.totalorder %s89_s26, %s150_s2 }
  0x9b   :  { %p95_p1 = pnand %p93_p0, %p90_p13 }
  0x9d   :  { %98 = shalt.err (!%p95_p1)
}
  0x9e   :  { %45 = dma.vmem_to_hbm [thread:$0]  %s43_s24, 256, %s150_s2, [#allocation4]  }
  0x9f   :  { %101 = dma.done.wait [#allocation4], 256  }
  0xa0   :  { %102 = vsyncadd [#allocation4], 4294967040 }
  0xa1   :  { %49 = vsyncpa [#allocation3], 1 }
  0xa2   :  { %50 = vsyncpa [#allocation4], 1 }

</bundles_post_ra>
